<compile_context>
chip_gen: v5e
topology: v5e:2x2
jax: 0.10.0
libtpu: 0.0.40
codegen_flags: <defaults>
</compile_context>

<pallas_src>
import time
from collections import defaultdict
from dataclasses import dataclass

import jax
import jax.numpy as jnp
from jax.experimental import pallas as pl
from jax.experimental.pallas import tpu as pltpu


# ---------------------------------------------------------------------------
# Kernel: whole-array HBM -> HBM copy via one async DMA.
# ---------------------------------------------------------------------------
def _dma_identity_kernel(x_hbm_ref, o_hbm_ref, sem):
    # Identity pass-through of the whole array.
    # TODO(synk): `_forward_impl` is abstract in the PyTorch base class; a
    # concrete subclass's compute would replace this body.
    cp = pltpu.make_async_copy(x_hbm_ref, o_hbm_ref, sem)
    cp.start()
    cp.wait()


@jax.jit
def pallas_forward_impl(x: jax.Array) -> jax.Array:
    """Kernel-backed equivalent of the (abstract) _forward_impl: identity."""
    return pl.pallas_call(
        _dma_identity_kernel,
        out_shape=jax.ShapeDtypeStruct(x.shape, x.dtype),
        # Leave both operands in HBM; the kernel DMAs directly between them.
        in_specs=[pl.BlockSpec(memory_space=pl.ANY)],
        out_specs=pl.BlockSpec(memory_space=pl.ANY),
        scratch_shapes=[pltpu.SemaphoreType.DMA(())],
    )(x)


# ---------------------------------------------------------------------------
# Module port
# ---------------------------------------------------------------------------
@dataclass
class EnhancedOptimizationConfig:
    enable_adaptive_precision: bool = True
    enable_dynamic_kernel_fusion: bool = True
    enable_intelligent_memory_management: bool = True
    enable_self_optimizing_components: bool = True
    enable_quantum_inspired_optimizations: bool = True
    enable_neural_architecture_search: bool = True
    optimization_aggressiveness: float = 0.8
    memory_efficiency_threshold: float = 0.9
    computational_efficiency_threshold: float = 0.85
    auto_optimization_interval: int = 100


class SelfOptimizingComponent:
    """JAX/Pallas port of the PyTorch SelfOptimizingComponent base class."""

    def __init__(self, config: EnhancedOptimizationConfig):
        self.config = config
        self.optimization_counter = 0
        self.performance_metrics = defaultdict(list)

    def forward(self, x: jax.Array) -> jax.Array:
        start_time = time.time()
        output = self._forward_impl(x)
        # Host sync kept for timing parity with the eager PyTorch module.
        jax.block_until_ready(output)
        execution_time = time.time() - start_time
        self.performance_metrics['execution_time'].append(execution_time)
        self.performance_metrics['input_shape'].append(tuple(x.shape))
        self.performance_metrics['output_shape'].append(tuple(output.shape))
        self.optimization_counter += 1
        if (self.optimization_counter % self.config.auto_optimization_interval == 0
                and self.config.enable_self_optimizing_components):
            self._self_optimize()
        return output

    def __call__(self, x: jax.Array) -> jax.Array:
        return self.forward(x)

    def _forward_impl(self, x: jax.Array) -> jax.Array:
        return pallas_forward_impl(x)

    def _self_optimize(self):
        if len(self.performance_metrics['execution_time']) < 10:
            return
        recent_times = self.performance_metrics['execution_time'][-10:]
        avg_time = sum(recent_times) / len(recent_times)
        if avg_time > 0.01:
            self._apply_speed_optimizations()
        for key in self.performance_metrics:
            self.performance_metrics[key] = self.performance_metrics[key][-50:]

    def _apply_speed_optimizations(self):
        pass


if __name__ == "__main__":
    key = jax.random.PRNGKey(0)
    # NCHW input, small shapes: batch=2, channels=4, spatial=16x16
    x = jax.random.normal(key, (2, 4, 16, 16), dtype=jnp.float32)

    config = EnhancedOptimizationConfig()
    module = SelfOptimizingComponent(config)

    out = module(x)
    out = jax.block_until_ready(out)

    assert out.shape == x.shape, (out.shape, x.shape)
    assert out.dtype == x.dtype, (out.dtype, x.dtype)
    assert bool(jnp.allclose(out, x)), "identity pass-through mismatch"
    assert module.optimization_counter == 1
    assert module.performance_metrics['input_shape'][0] == (2, 4, 16, 16)

    print("KERNEL_OK")
</pallas_src>

<mosaic_0001>
module attributes {stable_mosaic.version = 11 : i64} {
  func.func @_dma_identity_kernel(%arg0: memref<2x4x16x16xf32, #tpu.memory_space<any>>, %arg1: memref<2x4x16x16xf32, #tpu.memory_space<any>>, %arg2: memref<!tpu.dma_semaphore, #tpu.memory_space<semaphore_mem>>) attributes {dimension_semantics = [], scalar_prefetch = 0 : i64, scratch_operands = 1 : i64, tpu.core_type = #tpu.core_type<tc>} {
    tpu.enqueue_dma source(%arg0 : memref<2x4x16x16xf32, #tpu.memory_space<any>>) target(%arg1 : memref<2x4x16x16xf32, #tpu.memory_space<any>>) target_semaphore(%arg2 : memref<!tpu.dma_semaphore, #tpu.memory_space<semaphore_mem>>)
    tpu.wait_dma2 semaphore(%arg2 : memref<!tpu.dma_semaphore, #tpu.memory_space<semaphore_mem>>) src(%arg0 : memref<2x4x16x16xf32, #tpu.memory_space<any>>) dst(%arg1 : memref<2x4x16x16xf32, #tpu.memory_space<any>>)
    return
  }
}

</mosaic_0001>

<bundles_post_ra>
// kernel: pallas_forward_impl.1
= control target key start
LH: loop header
LB: loop body
LE: loop exit
PB: predicated region body
PF: predicated region fallthrough
CT: control target
= control target key end

     0   :  { %s34_s12 = smov [#allocation2]   ;;  %s35_s13 = smov [#allocation3]   ;;  %s53_s0 = inlined_call_operand.hbm [shape: f32[2,4,16,16], index: 0, kind: input, shape index: {}]   ;;  %s54_s1 = inlined_call_operand.hbm [shape: f32[2,4,16,16], index: 1, kind: output, shape index: {}]  }
   0x1   :  { %s10_s8 = sshll.u32 %s53_s0, 4  ;;  %s12_s11 = sshll.u32 %s54_s1, 4  ;;  %s11_s8 = int_to_ptr.hbm [resolvable:$true] %s10_s8  ;;  %s13_s11 = int_to_ptr.hbm [resolvable:$true] %s12_s11 }
   0x2   :  { %s36_s14 = smov 0  }
   0x3   :  { %16 = dma.general %s11_s8, 2048, %s13_s11, %s34_s12, %s35_s13, [#allocation4], %s36_s14, 0  }
   0x4   :  { %32 = dma.done.wait [#allocation2], 2048 }
   0x5   :  { %33 = vsyncadd [#allocation2], 4294965248 }
   0x6   :  { %22 = vsyncmov [#allocation2] }
   0x9   :  { %s23_s15 = vpop.sfrf %22 }
   0xa   :  { %p28_p0 = scmp.ne.s32.totalorder %s23_s15, 0 }
   0xc   :  { %27 = shalt.err (%p28_p0)  }

</bundles_post_ra>
